<compile_context>
chip_gen: v7x
topology: tpu7x:2x2x1
jax: 0.10.0
libtpu: 0.0.40
codegen_flags: <defaults>
</compile_context>

<pallas_src>
import jax
import jax.numpy as jnp
from jax.experimental import pallas as pl
from jax.experimental.pallas import tpu as pltpu

_LANE = 128      # lane width (last dim)
_SUBLANE = 8     # f32 sublane height (x / out refs stay f32)


def _round_up(x, m):
    return ((x + m - 1) // m) * m


# ---------------------------------------------------------------------------
# Kernels.  Hidden widths are lane-dense (multiples of 128); the output store
# is narrow (output_dim columns) to avoid 32x-inflated HBM writes.
# Matmuls run with (optionally bf16) inputs and f32 accumulation on the MXU.
# ---------------------------------------------------------------------------
def _dqn_arch1_kernel(x_ref, w_in_ref, b_in_ref, w_out_ref, b_out_ref, o_ref):
    cdt = w_in_ref.dtype   # compute dtype for MXU inputs (bf16 or f32)
    h = jnp.dot(x_ref[...].astype(cdt), w_in_ref[...],
                preferred_element_type=jnp.float32)
    h = jnp.maximum(h + b_in_ref[...], 0.0)
    o = jnp.dot(h.astype(cdt), w_out_ref[...],
                preferred_element_type=jnp.float32)
    o = o + b_out_ref[...]
    o_ref[...] = o[:, :o_ref.shape[1]].astype(o_ref.dtype)


def _dqn_arch2_kernel(x_ref, w_in_ref, b_in_ref, w_mid_ref, b_mid_ref,
                      w_out_ref, b_out_ref, o_ref):
    cdt = w_in_ref.dtype
    h = jnp.dot(x_ref[...].astype(cdt), w_in_ref[...],
                preferred_element_type=jnp.float32)
    h = jnp.maximum(h + b_in_ref[...], 0.0)
    h = jnp.dot(h.astype(cdt), w_mid_ref[...],
                preferred_element_type=jnp.float32)
    h = jnp.maximum(h + b_mid_ref[...], 0.0)
    o = jnp.dot(h.astype(cdt), w_out_ref[...],
                preferred_element_type=jnp.float32)
    o = o + b_out_ref[...]
    o_ref[...] = o[:, :o_ref.shape[1]].astype(o_ref.dtype)


# ---------------------------------------------------------------------------
# Parameter init: PyTorch nn.Linear-style U(-1/sqrt(fan_in), +), stored
# transposed ([in, out]), zero-padded to lane-dense shapes once here.
# Weights are stored in `compute_dtype` (bf16 default); biases stay f32.
# ---------------------------------------------------------------------------
def _init_linear_padded(key, in_features, out_features, in_padded, out_padded,
                        w_dtype):
    kw, kb = jax.random.split(key)
    bound = 1.0 / (float(in_features) ** 0.5)
    w = jax.random.uniform(kw, (in_features, out_features), jnp.float32,
                           minval=-bound, maxval=bound)
    b = jax.random.uniform(kb, (1, out_features), jnp.float32,
                           minval=-bound, maxval=bound)
    w_p = jnp.zeros((in_padded, out_padded), jnp.float32)
    w_p = w_p.at[:in_features, :out_features].set(w).astype(w_dtype)
    b_p = jnp.zeros((1, out_padded), jnp.float32)
    b_p = b_p.at[:, :out_features].set(b)
    return w_p, b_p


def init_dqn_params(key, input_dim, output_dim, neurons, architecture,
                    compute_dtype=jnp.bfloat16):
    neurons_p = _round_up(neurons, _LANE)
    out_p = _round_up(output_dim, _LANE)
    if architecture == 1:
        k1, k2 = jax.random.split(key, 2)
        w_in, b_in = _init_linear_padded(k1, input_dim, neurons,
                                         input_dim, neurons_p, compute_dtype)
        w_out, b_out = _init_linear_padded(k2, neurons, output_dim,
                                           neurons_p, out_p, compute_dtype)
        return (w_in, b_in, w_out, b_out)
    elif architecture == 2:
        k1, k2, k3 = jax.random.split(key, 3)
        w_in, b_in = _init_linear_padded(k1, input_dim, neurons,
                                         input_dim, neurons_p, compute_dtype)
        w_mid, b_mid = _init_linear_padded(k2, neurons, neurons,
                                           neurons_p, neurons_p, compute_dtype)
        w_out, b_out = _init_linear_padded(k3, neurons, output_dim,
                                           neurons_p, out_p, compute_dtype)
        return (w_in, b_in, w_mid, b_mid, w_out, b_out)
    else:
        raise ValueError("architecture must be 1 or 2")


# ---------------------------------------------------------------------------
# Wrapper
# ---------------------------------------------------------------------------
def dqn_forward(x, params, architecture, output_dim, *, tile_b=2048):
    """Fused DQN forward.

    x:       [B, input_dim] float32
    params:  padded params from init_dqn_params (PyTorch-transposed layout)
    returns: [B, output_dim] float32
    """
    b, in_dim = x.shape
    kernel = _dqn_arch1_kernel if architecture == 1 else _dqn_arch2_kernel

    hidden_p = params[0].shape[1]   # padded hidden width
    out_p = params[-1].shape[1]     # padded output width (compute only)

    # --- batch tiling -------------------------------------------------------
    # Pad the batch only to the sublane multiple; then shrink the tile so the
    # grid covers the batch with at most a few padded rows.
    b_pad = _round_up(b, _SUBLANE)
    if b_pad > _SUBLANE:
        # Guarantee >= 2 grid steps whenever the batch spans 2+ sublane tiles
        # so the "parallel" batch axis actually splits across v7x's two TCs.
        tile_b = min(tile_b, _round_up(pl.cdiv(b_pad, 2), _SUBLANE))
    tile_b = min(tile_b, b_pad)
    num_tiles = pl.cdiv(b_pad, tile_b)
    tile_b = _round_up(pl.cdiv(b_pad, num_tiles), _SUBLANE)
    b_pad = tile_b * num_tiles
    if b_pad != b:
        x = jnp.pad(x, ((0, b_pad - b), (0, 0)))

    x_spec = pl.BlockSpec((tile_b, in_dim), lambda i: (i, 0))
    # Narrow output: last dim == full array dim (legal), 32x fewer HBM bytes
    # than storing the 128-wide padded head, and no wrapper column slice.
    out_spec = pl.BlockSpec((tile_b, output_dim), lambda i: (i, 0))
    # Weights/biases: full-array blocks with constant index maps -> fetched
    # once, resident in VMEM across all grid steps.
    param_specs = [pl.BlockSpec(p.shape, lambda i: (0, 0)) for p in params]

    # Advisory cost estimate so XLA schedules this custom call sensibly.
    flops = 2 * b_pad * (in_dim * hidden_p + hidden_p * out_p)
    if architecture == 2:
        flops += 2 * b_pad * hidden_p * hidden_p
    bytes_accessed = (x.dtype.itemsize * b_pad * in_dim
                      + 4 * b_pad * output_dim
                      + sum(int(p.size) * p.dtype.itemsize for p in params))

    out = pl.pallas_call(
        kernel,
        out_shape=jax.ShapeDtypeStruct((b_pad, output_dim), jnp.float32),
        grid=(num_tiles,),
        in_specs=[x_spec] + param_specs,
        out_specs=out_spec,
        compiler_params=pltpu.CompilerParams(
            dimension_semantics=("parallel",)),   # megacore split on v7x
        cost_estimate=pl.CostEstimate(
            flops=flops, transcendentals=0, bytes_accessed=bytes_accessed),
    )(x, *params)

    return out[:b] if b_pad != b else out


# Pure-JAX reference mirroring the kernel math (same cast points, f32 accum).
def dqn_reference(x, params, architecture, output_dim):
    cdt = params[0].dtype
    hi = jax.lax.Precision.HIGHEST
    if architecture == 1:
        w_in, b_in, w_out, b_out = params
        h = jnp.maximum(jnp.dot(x.astype(cdt), w_in, precision=hi,
                                preferred_element_type=jnp.float32) + b_in, 0.0)
        o = jnp.dot(h.astype(cdt), w_out, precision=hi,
                    preferred_element_type=jnp.float32) + b_out
    else:
        w_in, b_in, w_mid, b_mid, w_out, b_out = params
        h = jnp.maximum(jnp.dot(x.astype(cdt), w_in, precision=hi,
                                preferred_element_type=jnp.float32) + b_in, 0.0)
        h = jnp.maximum(jnp.dot(h.astype(cdt), w_mid, precision=hi,
                                preferred_element_type=jnp.float32) + b_mid, 0.0)
        o = jnp.dot(h.astype(cdt), w_out, precision=hi,
                    preferred_element_type=jnp.float32) + b_out
    return o[:, :output_dim]


if __name__ == "__main__":
    key = jax.random.PRNGKey(0)
    kx, kx2, kp1, kp2 = jax.random.split(key, 4)

    batch = 8
    input_dim = 16
    output_dim = 4
    neurons = 32

    x = jax.random.normal(kx, (batch, input_dim), jnp.float32)

    ok = True
    # Test both architectures in both compute dtypes (bf16 default, f32 exact).
    for dtype, tol in ((jnp.bfloat16, 1e-2), (jnp.float32, 1e-4)):
        for arch, kp in ((1, kp1), (2, kp2)):
            params = init_dqn_params(kp, input_dim, output_dim, neurons, arch,
                                     compute_dtype=dtype)
            out = jax.block_until_ready(
                dqn_forward(x, params, arch, output_dim))
            ref = dqn_reference(x, params, arch, output_dim)
            if out.shape != (batch, output_dim):
                ok = False
            if not jnp.allclose(out, ref, atol=tol, rtol=tol):
                ok = False

    # Exercise the multi-step grid / row-padding path (>= 2 grid steps).
    batch2 = 200
    x2 = jax.random.normal(kx2, (batch2, input_dim), jnp.float32)
    params2 = init_dqn_params(kp2, input_dim, output_dim, neurons, 2,
                              compute_dtype=jnp.bfloat16)
    out2 = jax.block_until_ready(dqn_forward(x2, params2, 2, output_dim))
    ref2 = dqn_reference(x2, params2, 2, output_dim)
    if out2.shape != (batch2, output_dim):
        ok = False
    if not jnp.allclose(out2, ref2, atol=1e-2, rtol=1e-2):
        ok = False

    if ok:
        print("KERNEL_OK")
</pallas_src>

<mosaic_0001>
module attributes {stable_mosaic.version = 11 : i64} {
  func.func @_dqn_arch1_kernel(%arg0: i32, %arg1: memref<8x16xf32, #tpu.memory_space<vmem>>, %arg2: memref<16x128xbf16, #tpu.memory_space<vmem>>, %arg3: memref<1x128xf32, #tpu.memory_space<vmem>>, %arg4: memref<128x128xbf16, #tpu.memory_space<vmem>>, %arg5: memref<1x128xf32, #tpu.memory_space<vmem>>, %arg6: memref<8x4xf32, #tpu.memory_space<vmem>>) attributes {dimension_semantics = [#tpu.dimension_semantics<parallel>], iteration_bounds = array<i64: 1>, scalar_prefetch = 0 : i64, scratch_operands = 0 : i64, tpu.core_type = #tpu.core_type<tc>, window_params = [{transform_indices = @transform_0, window_bounds = array<i64: 8, 16>}, {pipeline_mode = #tpu.pipeline_mode<synchronous>, transform_indices = @transform_1, window_bounds = array<i64: 16, 128>}, {pipeline_mode = #tpu.pipeline_mode<synchronous>, transform_indices = @transform_2, window_bounds = array<i64: 1, 128>}, {pipeline_mode = #tpu.pipeline_mode<synchronous>, transform_indices = @transform_3, window_bounds = array<i64: 128, 128>}, {pipeline_mode = #tpu.pipeline_mode<synchronous>, transform_indices = @transform_4, window_bounds = array<i64: 1, 128>}, {transform_indices = @transform_5, window_bounds = array<i64: 8, 4>}]} {
    %c0 = arith.constant 0 : index
    %c0_0 = arith.constant 0 : index
    %0 = vector.load %arg1[%c0, %c0_0] : memref<8x16xf32, #tpu.memory_space<vmem>>, vector<8x16xf32>
    %1 = arith.truncf %0 : vector<8x16xf32> to vector<8x16xbf16>
    %c0_1 = arith.constant 0 : index
    %c0_2 = arith.constant 0 : index
    %2 = vector.load %arg2[%c0_1, %c0_2] : memref<16x128xbf16, #tpu.memory_space<vmem>>, vector<16x128xbf16>
    %cst = arith.constant dense<0.000000e+00> : vector<8x128xf32>
    %3 = tpu.matmul %1, %2, %cst {dimension_numbers = #tpu.dot_dimension_numbers<[1], [0], [0], [1], [0, 0, 1, 1], [], []>} : vector<8x16xbf16>, vector<16x128xbf16>, vector<8x128xf32> -> vector<8x128xf32>
    %c0_3 = arith.constant 0 : index
    %c0_4 = arith.constant 0 : index
    %4 = vector.load %arg3[%c0_3, %c0_4] : memref<1x128xf32, #tpu.memory_space<vmem>>, vector<1x128xf32>
    %5 = vector.broadcast %4 : vector<1x128xf32> to vector<8x128xf32>
    %6 = arith.addf %3, %5 : vector<8x128xf32>
    %cst_5 = arith.constant 0.000000e+00 : f32
    %7 = vector.broadcast %cst_5 : f32 to vector<8x128xf32>
    %8 = arith.maximumf %6, %7 : vector<8x128xf32>
    %9 = arith.truncf %8 : vector<8x128xf32> to vector<8x128xbf16>
    %c0_6 = arith.constant 0 : index
    %c0_7 = arith.constant 0 : index
    %10 = vector.load %arg4[%c0_6, %c0_7] : memref<128x128xbf16, #tpu.memory_space<vmem>>, vector<128x128xbf16>
    %cst_8 = arith.constant dense<0.000000e+00> : vector<8x128xf32>
    %11 = tpu.matmul %9, %10, %cst_8 {dimension_numbers = #tpu.dot_dimension_numbers<[1], [0], [0], [1], [0, 0, 1, 1], [], []>} : vector<8x128xbf16>, vector<128x128xbf16>, vector<8x128xf32> -> vector<8x128xf32>
    %c0_9 = arith.constant 0 : index
    %c0_10 = arith.constant 0 : index
    %12 = vector.load %arg5[%c0_9, %c0_10] : memref<1x128xf32, #tpu.memory_space<vmem>>, vector<1x128xf32>
    %13 = vector.broadcast %12 : vector<1x128xf32> to vector<8x128xf32>
    %14 = arith.addf %11, %13 : vector<8x128xf32>
    %15 = vector.extract_strided_slice %14 {offsets = [0, 0], sizes = [8, 4], strides = [1, 1]} : vector<8x128xf32> to vector<8x4xf32>
    %c0_11 = arith.constant 0 : index
    %c0_12 = arith.constant 0 : index
    %16 = vector.load %arg6[%c0_11, %c0_12] : memref<8x4xf32, #tpu.memory_space<vmem>>, vector<8x4xf32>
    tpu.vector_store %arg6[%c0_11, %c0_12], %15 {strides = array<i32>} : memref<8x4xf32, #tpu.memory_space<vmem>>, vector<8x4xf32>,
    return
  }
  func.func @transform_0(%arg0: i32) -> (i32, i32) {
    %c0_i32 = arith.constant 0 : i32
    %c0_i32_0 = arith.constant 0 : i32
    return %arg0, %c0_i32 : i32, i32
  }
  func.func @transform_1(%arg0: i32) -> (i32, i32) {
    %c0_i32 = arith.constant 0 : i32
    %c0_i32_0 = arith.constant 0 : i32
    %c0_i32_1 = arith.constant 0 : i32
    return %c0_i32, %c0_i32_0 : i32, i32
  }
  func.func @transform_2(%arg0: i32) -> (i32, i32) {
    %c0_i32 = arith.constant 0 : i32
    %c0_i32_0 = arith.constant 0 : i32
    %c0_i32_1 = arith.constant 0 : i32
    return %c0_i32, %c0_i32_0 : i32, i32
  }
  func.func @transform_3(%arg0: i32) -> (i32, i32) {
    %c0_i32 = arith.constant 0 : i32
    %c0_i32_0 = arith.constant 0 : i32
    %c0_i32_1 = arith.constant 0 : i32
    return %c0_i32, %c0_i32_0 : i32, i32
  }
  func.func @transform_4(%arg0: i32) -> (i32, i32) {
    %c0_i32 = arith.constant 0 : i32
    %c0_i32_0 = arith.constant 0 : i32
    %c0_i32_1 = arith.constant 0 : i32
    return %c0_i32, %c0_i32_0 : i32, i32
  }
  func.func @transform_5(%arg0: i32) -> (i32, i32) {
    %c0_i32 = arith.constant 0 : i32
    %c0_i32_0 = arith.constant 0 : i32
    return %arg0, %c0_i32 : i32, i32
  }
}

</mosaic_0001>

<bundles_post_ra>
// kernel: tpu_custom_call.1
= control target key start
LH: loop header
LB: loop body
LE: loop exit
PB: predicated region body
PF: predicated region fallthrough
CT: control target
= control target key end

     0   :  { %10 = vsyncpa [#allocation3], 0  ;;  %s465_s0 = inlined_call_operand.hbm [shape: f32[8,16], index: 0, kind: input, shape index: {}]   ;;  %s466_s1 = inlined_call_operand.hbm [shape: bf16[16,128], index: 1, kind: input, shape index: {}]   ;;  %s467_s2 = inlined_call_operand.vmem [shape: f32[1,128], index: 2, kind: input, shape index: {}]   ;;  %s468_s3 = inlined_call_operand.hbm [shape: bf16[128,128], index: 3, kind: input, shape index: {}]   ;;  %s469_s4 = inlined_call_operand.vmem [shape: f32[1,128], index: 4, kind: input, shape index: {}]   ;;  %s470_s5 = inlined_call_operand.vmem [shape: f32[8,4], index: 5, kind: output, shape index: {}]  }
   0x1   :  { %11 = vsyncpa [#allocation5], 0  ;;  %s377_s18 = smov [#allocation4]   ;;  %s307_s22 = scalar_lea.hbm %s466_s1, 128 }
   0x2   :  { %s27_s19 = sshll.u32 %s377_s18, 4  ;;  %p308_p0 = scmp.ne.s32.totalorder %s466_s1, %s307_s22  ;;  %s28_s19 = int_to_ptr.vmem [resolvable:$true] %s27_s19 }
   0x3   :  { %p311_p1 = scmp.lt.u32.totalorder %s307_s22, %s466_s1 }
   0x5   :  { %p313_p2 = pnand %p311_p1, %p308_p0 }
   0x7   :  { %316 = shalt.err (!%p313_p2)
}
   0x8   :  { %s317_s27 = scalar_lea.vmem %s28_s19, 128  ;;  %p322_p4 = scmp.lt.s32.totalorder %s28_s19, %s28_s19 }
   0x9   :  { %p318_p3 = scmp.ne.s32.totalorder %s28_s19, %s317_s27  ;;  %p323_p5 = scmp.lt.s32.totalorder %s317_s27, %s317_s27 }
   0xb   :  { %p324_p6 = por %p323_p5, %p322_p4 }
   0xd   :  { %p325_p7 = pnand %p324_p6, %p318_p3 }
   0xf   :  { %328 = shalt.err (!%p325_p7)
}
  0x10   :  { %s378_s28 = smov 64   ;;  %s379_s29 = smov 4  }
  0x11   :  { %33 = dma.hbm_to_vmem [thread:$0]  %s466_s1, 128, %s28_s19, [#allocation5], %s378_s28, %s378_s28, %s379_s29  }
  0x12   :  { %s380_s7 = smov [#allocation2]   ;;  %s381_s9 = smov [#allocation6]  }
  0x13   :  { %s18_s8 = sshll.u32 %s380_s7, 4  ;;  %s41_s10 = sshll.u32 %s381_s9, 4  ;;  %s19_s8 = int_to_ptr.vmem [resolvable:$true] %s18_s8  ;;  %s42_s10 = int_to_ptr.vmem [resolvable:$true] %s41_s10 }
  0x14   :  { %s329_s13 = scalar_lea.hbm %s465_s0, 128 }
  0x15   :  { %p330_p8 = scmp.ne.s32.totalorder %s465_s0, %s329_s13  ;;  %p333_p9 = scmp.lt.u32.totalorder %s329_s13, %s465_s0 }
  0x17   :  { %p335_p10 = pnand %p333_p9, %p330_p8 }
  0x19   :  { %338 = shalt.err (!%p335_p10)
}
  0x1a   :  { %s339_s1 = scalar_lea.vmem %s19_s8, 128  ;;  %p344_p12 = scmp.lt.s32.totalorder %s19_s8, %s19_s8 }
  0x1b   :  { %p340_p11 = scmp.ne.s32.totalorder %s19_s8, %s339_s1  ;;  %p345_p13 = scmp.lt.s32.totalorder %s339_s1, %s339_s1 }
  0x1d   :  { %p346_p0 = por %p345_p13, %p344_p12 }
  0x1f   :  { %p347_p1 = pnand %p346_p0, %p340_p11 }
  0x21   :  { %350 = shalt.err (!%p347_p1)
}
  0x22   :  { %21 = dma.hbm_to_vmem [thread:$0]  %s465_s0, 128, %s19_s8, [#allocation3]  }
  0x23   :  { %s351_s22 = scalar_lea.hbm %s468_s3, 1024 }
  0x24   :  { %p352_p2 = scmp.ne.s32.totalorder %s468_s3, %s351_s22  ;;  %p355_p3 = scmp.lt.u32.totalorder %s351_s22, %s468_s3 }
  0x26   :  { %p357_p4 = pnand %p355_p3, %p352_p2 }
  0x28   :  { %360 = shalt.err (!%p357_p4)
}
  0x29   :  { %s361_s27 = scalar_lea.vmem %s42_s10, 1024  ;;  %p366_p6 = scmp.lt.s32.totalorder %s42_s10, %s42_s10 }
  0x2a   :  { %p362_p5 = scmp.ne.s32.totalorder %s42_s10, %s361_s27  ;;  %p367_p7 = scmp.lt.s32.totalorder %s361_s27, %s361_s27 }
  0x2c   :  { %p368_p8 = por %p367_p7, %p366_p6 }
  0x2e   :  { %p369_p9 = pnand %p368_p8, %p362_p5 }
  0x30   :  { %372 = shalt.err (!%p369_p9)
}
  0x31   :  { %47 = dma.hbm_to_vmem [thread:$0]  %s468_s3, 1024, %s42_s10, [#allocation5], %s378_s28, %s378_s28, %s379_s29  }
  0x32   :  { %373 = dma.done.wait [#allocation3], 128  }
  0x33   :  { %374 = vsyncadd [#allocation3], 4294967168 }
  0x34   :  { %375 = dma.done.wait [#allocation5], 1152  }
  0x35   :  { %376 = vsyncadd [#allocation5], 4294966144  ;;  %v382_v0 = vmov 0.0   ;;  %vm383_vm0 = vmmov 0   ;;  %v298_v1 = vld [vmem:[#allocation4] sm:$0xff]   ;;  %v60_v2 = vld [vmem:[#allocation2] sm:$0xff] }
  0x36   :  { %265 = vmatprep.subr.bf16.mxu0 %v382_v0  ;;  %267 = vmatprep.mubr.msk.bf16.mxu0 %vm383_vm0, %v382_v0  ;;  %v61_v3 = vpack.c.bf16 %v60_v2, %v60_v2  ;;  %vm77_vm1 = vcmask 130048   ;;  %v299_v4 = vld [vmem:[#allocation6] sm:$0xff]   ;;  %v300_v5 = vld [vmem:[#allocation6 + $0x8] sm:$0xff]   ;;  %v301_v6 = vld [vmem:[#allocation6 + $0x10] sm:$0xff]   ;;  %vm234_vm2 = vcmask 31744  }
  0x37   :  { %271 = vmatprep.subr.bf16.mxu1 %v382_v0  ;;  %287 = vmatprep.mubr.msk.bf16.mxu1 %vm383_vm0, %v382_v0  ;;  %v302_v7 = vld [vmem:[#allocation6 + $0x18] sm:$0xff]   ;;  %v303_v8 = vld [vmem:[#allocation6 + $0x20] sm:$0xff]   ;;  %v304_v9 = vld [vmem:[#allocation6 + $0x28] sm:$0xff]  }
  0x38   :  { %266 = vmatpush3.bf16.msra.mxu0 %v298_v1  ;;  %272 = vmatpush3.bf16.msra.mxu1 %v299_v4  ;;  %v305_v10 = vld [vmem:[#allocation6 + $0x30] sm:$0xff]   ;;  %v306_v11 = vld [vmem:[#allocation6 + $0x38] sm:$0xff]  }
  0x39   :  { %273 = vmatprep.subr.bf16.mxu1 %v382_v0  ;;  %v242_v12 = vld [vmem:[%s467_s2] ss:$0 sm:$0xff] }
  0x3a   :  { %v245_v20 = vld [vmem:[%s469_s4] ss:$0 sm:$0xff] }
  0x3b   :  { %268 = vmatmul.mubr.msk.bf16.vlgmr.msra.gmra.mrb[0].mxu0 %vm77_vm1, %v61_v3 }
  0x3c   :  { %274 = vmatpush3.bf16.msra.mxu1 %v300_v5 }
  0x3d   :  { %275 = vmatprep.subr.bf16.mxu1 %v382_v0 }
  0x40   :  { %276 = vmatpush3.bf16.msra.mxu1 %v301_v6 }
  0x41   :  { %277 = vmatprep.subr.bf16.mxu1 %v382_v0 }
  0x44   :  { %278 = vmatpush3.bf16.msra.mxu1 %v302_v7 }
  0x45   :  { %279 = vmatprep.subr.bf16.mxu1 %v382_v0 }
  0x48   :  { %280 = vmatpush3.bf16.msra.mxu1 %v303_v8 }
  0x49   :  { %281 = vmatprep.subr.bf16.mxu1 %v382_v0 }
  0x4c   :  { %282 = vmatpush3.bf16.msra.mxu1 %v304_v9 }
  0x4d   :  { %283 = vmatprep.subr.bf16.mxu1 %v382_v0 }
  0x50   :  { %284 = vmatpush3.bf16.msra.mxu1 %v305_v10 }
  0x51   :  { %285 = vmatprep.subr.bf16.mxu1 %v382_v0 }
  0x54   :  { %286 = vmatpush3.bf16.msra.mxu1 %v306_v11 }
 0x10e   :  { %v115_v13 = vpop.f32.mrb[0].mxu0 }
 0x10f   :  { %v116_v14 = vadd.f32 %v242_v12, %v115_v13  ;;  %v269_v15 = vpop.f32.mrb[1].mxu0 }
 0x110   :  { %v118_v16 = vpop.f32.mrb[2].mxu0 }
 0x111   :  { %v121_v17 = vmax.f32 %v116_v14, 0.0  ;;  %v270_v18 = vpop.f32.mrb[3].mxu0 }
 0x113   :  { %v122_v19 = vpack.c.bf16 %v121_v17, %v121_v17 }
 0x115   :  { %288 = vmatmul.mubr.bf16.vlgmr.msra.gmra.mrb[0].mxu1 %v122_v19 }
 0x1e8   :  { %v228_v21 = vpop.f32.mrb[0].mxu1 }
 0x1e9   :  { %v229_v22 = vadd.f32 %v245_v20, %v228_v21  ;;  %v289_v23 = vpop.f32.mrb[1].mxu1 }
 0x1ea   :  { %v231_v24 = vpop.f32.mrb[2].mxu1 }
 0x1eb   :  { %235 = vst.msk [vmem:[%s470_s5] sm:$0xff] %vm234_vm2, %v229_v22  ;;  %v290_v25 = vpop.f32.mrb[3].mxu1 }
 0x1ec   :  { %240 = vsyncpa [#allocation3], 1 }
 0x1ed   :  { %241 = vsyncpa [#allocation5], 1 }

</bundles_post_ra>
